<compile_context>
chip_gen: v6e
topology: v6e:2x2x1
jax: 0.10.0
libtpu: 0.0.40
codegen_flags: <defaults>
</compile_context>

<pallas_src>
import functools

import jax
import jax.numpy as jnp
from jax.experimental import pallas as pl
from jax.experimental.pallas import tpu as pltpu

LANE = 128
SUBLANE = 8


def cmd_kernel(x_ref, y_ref, out_ref, *, n_moments: int, inv_n: float,
               use_mxu_reduce: bool):
    """Process one (N, TILE_D) slab of x and y.

    out_ref is an (8, 128) f32 block resident across the inner ("arbitrary")
    D-tile axis; lane k accumulates the pre-sqrt sum of squared mean
    differences for moment k+1 (all sublanes carry the same value; the
    wrapper reads sublane 0 only).
    """
    j = pl.program_id(1)  # position along the per-core D-tile axis

    @pl.when(j == 0)
    def _():
        out_ref[...] = jnp.zeros_like(out_ref)

    n = x_ref.shape[0]

    if use_mxu_reduce:
        # N-axis (sublane) reduction on the idle MXU: ones(8, N) @ tile.
        ones_lhs = jnp.ones((SUBLANE, n), jnp.float32)

        def colsum(v):  # (N, TILE_D) -> (1, TILE_D)
            r = jnp.dot(ones_lhs, v, preferred_element_type=jnp.float32)
            return r[0:1, :]
    else:
        def colsum(v):
            return jnp.sum(v, axis=0, keepdims=True)

    def moment_rows(ref):
        """Per-feature mean + unscaled centered-power sums for one stream."""
        v = ref[...].astype(jnp.float32)          # f32 math (req. on v5e)
        mean = colsum(v) * inv_n                  # (1, TILE_D)
        c = v - mean
        rows = [mean]
        p = c
        # n_moments is a static int -> unrolled; running power avoids pow().
        for _ in range(2, n_moments + 1):
            p = p * c
            rows.append(colsum(p))                # sum_N c^k, scaled later
        return rows

    # x first, then y: halves the live full-tile f32 temporaries.
    rx = moment_rows(x_ref)
    ry = moment_rows(y_ref)

    lane = jax.lax.broadcasted_iota(jnp.int32, out_ref.shape, 1)
    upd = jnp.zeros(out_ref.shape, jnp.float32)
    for k in range(n_moments):
        d = rx[k] - ry[k]
        if k > 0:
            d = d * inv_n                          # scale BEFORE squaring
        dk2 = jnp.sum(d * d, keepdims=True)        # (1, 1) tile contribution
        upd = jnp.where(lane == k, dk2, upd)
    out_ref[...] += upd


def _vmem_capacity_bytes() -> int:
    try:
        info = pltpu.get_tpu_info()
        cap = getattr(info, "vmem_capacity_bytes", None)
        if cap:
            return int(cap)
    except Exception:
        pass
    return 128 * 1024 * 1024


def cmd(x, y, n_moments: int, *, tile_d: int | None = None,
        use_mxu_reduce: bool = True):
    """Pallas TPU implementation of CMD.forward(x, y, n_moments). Returns a scalar."""
    assert x.ndim == 2 and y.ndim == 2 and x.shape == y.shape
    assert 1 <= n_moments <= LANE

    # Stream native dtype (e.g. bf16) into the kernel; only cast non-floats.
    x = jnp.asarray(x)
    y = jnp.asarray(y)
    if not jnp.issubdtype(x.dtype, jnp.floating):
        x = x.astype(jnp.float32)
    if not jnp.issubdtype(y.dtype, jnp.floating):
        y = y.astype(jnp.float32)

    N, D = x.shape
    inv_n = 1.0 / float(N)
    in_bytes = max(jnp.dtype(x.dtype).itemsize, jnp.dtype(y.dtype).itemsize)

    # ---- generation-aware VMEM budget -----------------------------------
    cap = _vmem_capacity_bytes()
    if cap <= 64 * 1024 * 1024:            # v7x-class: 64 MiB / TensorCore
        resident_budget = 40 * 1024 * 1024
        vmem_limit = 56 * 1024 * 1024
    else:                                   # v5e / v6e: 128 MiB
        resident_budget = 72 * 1024 * 1024
        vmem_limit = 96 * 1024 * 1024
    vmem_limit = int(min(vmem_limit, cap - 4 * 1024 * 1024))

    # ---- tile_d selection -------------------------------------------------
    if tile_d is None:
        # Honest per-feature-column budget: 2 inputs x 2 pipeline buffers in
        # native dtype + ~3 live full-tile f32 temporaries per stream.
        bytes_per_col = N * (2 * 2 * in_bytes + 3 * 4)
        t = resident_budget // max(bytes_per_col, 1)
        t = (t // LANE) * LANE
        tile_d = int(min(max(t, LANE), 2048))
        if tile_d >= D and D >= 2 * LANE:
            # Prefer >=2 lane-aligned tiles so the "parallel" axis can be
            # sharded across both v7x TensorCores (no-op on 1-TC chips).
            tile_d = max(LANE, pl.cdiv(pl.cdiv(D, 2), LANE) * LANE)
    else:
        tile_d = D if tile_d >= D else max(LANE, (int(tile_d) // LANE) * LANE)

    if tile_d >= D:
        tile_d = D
        n_splits = 1
        tiles_per_core = 1
        d_padded = D
    else:
        n_splits = 2
        n_tiles = pl.cdiv(D, tile_d)
        n_tiles = pl.cdiv(n_tiles, n_splits) * n_splits
        tiles_per_core = n_tiles // n_splits
        d_padded = n_tiles * tile_d
        if d_padded != D:
            # Zero feature columns contribute exactly zero to every moment.
            x = jnp.pad(x, ((0, 0), (0, d_padded - D)))
            y = jnp.pad(y, ((0, 0), (0, d_padded - D)))

    kernel = functools.partial(cmd_kernel, n_moments=n_moments, inv_n=inv_n,
                               use_mxu_reduce=use_mxu_reduce)

    in_map = lambda c, j, _t=tiles_per_core: (0, c * _t + j)

    # NOTE: if profiling shows exposed DMA between short grid steps (small N),
    # add pipeline_mode=pl.Buffered(3) to the two input BlockSpecs.
    out = pl.pallas_call(
        kernel,
        out_shape=jax.ShapeDtypeStruct((n_splits * SUBLANE, LANE), jnp.float32),
        grid_spec=pltpu.PrefetchScalarGridSpec(
            num_scalar_prefetch=0,
            grid=(n_splits, tiles_per_core),
            in_specs=[
                pl.BlockSpec((N, tile_d), in_map),
                pl.BlockSpec((N, tile_d), in_map),
            ],
            out_specs=pl.BlockSpec((SUBLANE, LANE), lambda c, j: (c, 0)),
        ),
        compiler_params=pltpu.CompilerParams(
            dimension_semantics=("parallel", "arbitrary"),
            vmem_limit_bytes=vmem_limit,
        ),
    )(x, y)

    # Per-core, per-moment pre-sqrt partial sums -> combine + sqrt in JAX.
    partials = out.reshape(n_splits, SUBLANE, LANE)[:, 0, :n_moments]
    totals = jnp.sum(partials, axis=0)
    return jnp.sum(jnp.sqrt(totals))


def cmd_ref(x, y, n_moments: int):
    """Pure-JAX reference mirroring the PyTorch module (for sanity checking)."""
    x = jnp.asarray(x, jnp.float32)
    y = jnp.asarray(y, jnp.float32)
    mx = jnp.mean(x, axis=0)
    my = jnp.mean(y, axis=0)
    sx = x - mx
    sy = y - my
    scms = jnp.sqrt(jnp.sum((mx - my) ** 2))
    for k in range(2, n_moments + 1):
        ss1 = jnp.mean(sx ** k, axis=0)
        ss2 = jnp.mean(sy ** k, axis=0)
        scms = scms + jnp.sqrt(jnp.sum((ss1 - ss2) ** 2))
    return scms


if __name__ == "__main__":
    key = jax.random.PRNGKey(0)
    kx, ky = jax.random.split(key)

    # Small shape consistent with the module's (batch, features) inputs.
    N, D, n_moments = 8, 32, 5
    x = jax.random.normal(kx, (N, D), dtype=jnp.float32)
    y = jax.random.normal(ky, (N, D), dtype=jnp.float32) * 1.5 + 0.3

    out = jax.block_until_ready(cmd(x, y, n_moments))
    ref = jax.block_until_ready(cmd_ref(x, y, n_moments))
    # MXU f32 matmuls are multi-pass bf16 internally -> slightly looser tol.
    assert jnp.allclose(out, ref, rtol=2e-3, atol=1e-4), (out, ref)

    # VPU-reduction fallback path (tight tolerance).
    out_vpu = jax.block_until_ready(cmd(x, y, n_moments, use_mxu_reduce=False))
    assert jnp.allclose(out_vpu, ref, rtol=1e-4, atol=1e-5), (out_vpu, ref)

    # Tiled + zero-padded + two-way core-split accumulator path.
    N2, D2 = 16, 200
    x2 = jax.random.normal(kx, (N2, D2), dtype=jnp.float32) * 0.7 + 0.1
    y2 = jax.random.normal(ky, (N2, D2), dtype=jnp.float32)
    out2 = jax.block_until_ready(cmd(x2, y2, n_moments, tile_d=128))
    ref2 = jax.block_until_ready(cmd_ref(x2, y2, n_moments))
    assert jnp.allclose(out2, ref2, rtol=2e-3, atol=1e-4), (out2, ref2)

    print("KERNEL_OK")
</pallas_src>

<mosaic_0001>
module attributes {stable_mosaic.version = 11 : i64} {
  func.func @cmd_kernel(%arg0: i32, %arg1: i32, %arg2: memref<8x32xf32, #tpu.memory_space<vmem>>, %arg3: memref<8x32xf32, #tpu.memory_space<vmem>>, %arg4: memref<8x128xf32, #tpu.memory_space<vmem>>) attributes {dimension_semantics = [#tpu.dimension_semantics<parallel>, #tpu.dimension_semantics<arbitrary>], iteration_bounds = array<i64: 1, 1>, scalar_prefetch = 0 : i64, scratch_operands = 0 : i64, tpu.core_type = #tpu.core_type<tc>, window_params = [{transform_indices = @transform_0, window_bounds = array<i64: 8, 32>}, {transform_indices = @transform_1, window_bounds = array<i64: 8, 32>}, {transform_indices = @transform_2, window_bounds = array<i64: 8, 128>}]} {
    %c0_i32 = arith.constant 0 : i32
    %0 = arith.cmpi eq, %arg1, %c0_i32 : i32
    %1 = arith.extui %0 : i1 to i32
    %c0_i32_0 = arith.constant 0 : i32
    %2 = arith.cmpi ne, %1, %c0_i32_0 : i32
    scf.if %2 {
      %cst_31 = arith.constant 0.000000e+00 : f32
      %115 = vector.broadcast %cst_31 : f32 to vector<8x128xf32>
      %c0_32 = arith.constant 0 : index
      %c0_33 = arith.constant 0 : index
      %116 = vector.load %arg4[%c0_32, %c0_33] : memref<8x128xf32, #tpu.memory_space<vmem>>, vector<8x128xf32>
      tpu.vector_store %arg4[%c0_32, %c0_33], %115 {strides = array<i32>} : memref<8x128xf32, #tpu.memory_space<vmem>>, vector<8x128xf32>,
    } else {
    }
    %cst = arith.constant 1.000000e+00 : f32
    %3 = vector.broadcast %cst : f32 to vector<8x8xf32>
    %c0 = arith.constant 0 : index
    %c0_1 = arith.constant 0 : index
    %4 = vector.load %arg2[%c0, %c0_1] : memref<8x32xf32, #tpu.memory_space<vmem>>, vector<8x32xf32>
    %cst_2 = arith.constant dense<0.000000e+00> : vector<8x32xf32>
    %5 = tpu.matmul %3, %4, %cst_2 {dimension_numbers = #tpu.dot_dimension_numbers<[1], [0], [0], [1], [0, 0, 1, 1], [], []>} : vector<8x8xf32>, vector<8x32xf32>, vector<8x32xf32> -> vector<8x32xf32>
    %6 = vector.extract_strided_slice %5 {offsets = [0, 0], sizes = [1, 32], strides = [1, 1]} : vector<8x32xf32> to vector<1x32xf32>
    %cst_3 = arith.constant 1.250000e-01 : f32
    %7 = vector.broadcast %cst_3 : f32 to vector<1x32xf32>
    %8 = arith.mulf %6, %7 : vector<1x32xf32>
    %9 = vector.broadcast %8 : vector<1x32xf32> to vector<8x32xf32>
    %10 = arith.subf %4, %9 : vector<8x32xf32>
    %11 = arith.mulf %10, %10 : vector<8x32xf32>
    %cst_4 = arith.constant dense<0.000000e+00> : vector<8x32xf32>
    %12 = tpu.matmul %3, %11, %cst_4 {dimension_numbers = #tpu.dot_dimension_numbers<[1], [0], [0], [1], [0, 0, 1, 1], [], []>} : vector<8x8xf32>, vector<8x32xf32>, vector<8x32xf32> -> vector<8x32xf32>
    %13 = vector.extract_strided_slice %12 {offsets = [0, 0], sizes = [1, 32], strides = [1, 1]} : vector<8x32xf32> to vector<1x32xf32>
    %14 = arith.mulf %11, %10 : vector<8x32xf32>
    %cst_5 = arith.constant dense<0.000000e+00> : vector<8x32xf32>
    %15 = tpu.matmul %3, %14, %cst_5 {dimension_numbers = #tpu.dot_dimension_numbers<[1], [0], [0], [1], [0, 0, 1, 1], [], []>} : vector<8x8xf32>, vector<8x32xf32>, vector<8x32xf32> -> vector<8x32xf32>
    %16 = vector.extract_strided_slice %15 {offsets = [0, 0], sizes = [1, 32], strides = [1, 1]} : vector<8x32xf32> to vector<1x32xf32>
    %17 = arith.mulf %14, %10 : vector<8x32xf32>
    %cst_6 = arith.constant dense<0.000000e+00> : vector<8x32xf32>
    %18 = tpu.matmul %3, %17, %cst_6 {dimension_numbers = #tpu.dot_dimension_numbers<[1], [0], [0], [1], [0, 0, 1, 1], [], []>} : vector<8x8xf32>, vector<8x32xf32>, vector<8x32xf32> -> vector<8x32xf32>
    %19 = vector.extract_strided_slice %18 {offsets = [0, 0], sizes = [1, 32], strides = [1, 1]} : vector<8x32xf32> to vector<1x32xf32>
    %20 = arith.mulf %17, %10 : vector<8x32xf32>
    %cst_7 = arith.constant dense<0.000000e+00> : vector<8x32xf32>
    %21 = tpu.matmul %3, %20, %cst_7 {dimension_numbers = #tpu.dot_dimension_numbers<[1], [0], [0], [1], [0, 0, 1, 1], [], []>} : vector<8x8xf32>, vector<8x32xf32>, vector<8x32xf32> -> vector<8x32xf32>
    %22 = vector.extract_strided_slice %21 {offsets = [0, 0], sizes = [1, 32], strides = [1, 1]} : vector<8x32xf32> to vector<1x32xf32>
    %c0_8 = arith.constant 0 : index
    %c0_9 = arith.constant 0 : index
    %23 = vector.load %arg3[%c0_8, %c0_9] : memref<8x32xf32, #tpu.memory_space<vmem>>, vector<8x32xf32>
    %cst_10 = arith.constant dense<0.000000e+00> : vector<8x32xf32>
    %24 = tpu.matmul %3, %23, %cst_10 {dimension_numbers = #tpu.dot_dimension_numbers<[1], [0], [0], [1], [0, 0, 1, 1], [], []>} : vector<8x8xf32>, vector<8x32xf32>, vector<8x32xf32> -> vector<8x32xf32>
    %25 = vector.extract_strided_slice %24 {offsets = [0, 0], sizes = [1, 32], strides = [1, 1]} : vector<8x32xf32> to vector<1x32xf32>
    %cst_11 = arith.constant 1.250000e-01 : f32
    %26 = vector.broadcast %cst_11 : f32 to vector<1x32xf32>
    %27 = arith.mulf %25, %26 : vector<1x32xf32>
    %28 = vector.broadcast %27 : vector<1x32xf32> to vector<8x32xf32>
    %29 = arith.subf %23, %28 : vector<8x32xf32>
    %30 = arith.mulf %29, %29 : vector<8x32xf32>
    %cst_12 = arith.constant dense<0.000000e+00> : vector<8x32xf32>
    %31 = tpu.matmul %3, %30, %cst_12 {dimension_numbers = #tpu.dot_dimension_numbers<[1], [0], [0], [1], [0, 0, 1, 1], [], []>} : vector<8x8xf32>, vector<8x32xf32>, vector<8x32xf32> -> vector<8x32xf32>
    %32 = vector.extract_strided_slice %31 {offsets = [0, 0], sizes = [1, 32], strides = [1, 1]} : vector<8x32xf32> to vector<1x32xf32>
    %33 = arith.mulf %30, %29 : vector<8x32xf32>
    %cst_13 = arith.constant dense<0.000000e+00> : vector<8x32xf32>
    %34 = tpu.matmul %3, %33, %cst_13 {dimension_numbers = #tpu.dot_dimension_numbers<[1], [0], [0], [1], [0, 0, 1, 1], [], []>} : vector<8x8xf32>, vector<8x32xf32>, vector<8x32xf32> -> vector<8x32xf32>
    %35 = vector.extract_strided_slice %34 {offsets = [0, 0], sizes = [1, 32], strides = [1, 1]} : vector<8x32xf32> to vector<1x32xf32>
    %36 = arith.mulf %33, %29 : vector<8x32xf32>
    %cst_14 = arith.constant dense<0.000000e+00> : vector<8x32xf32>
    %37 = tpu.matmul %3, %36, %cst_14 {dimension_numbers = #tpu.dot_dimension_numbers<[1], [0], [0], [1], [0, 0, 1, 1], [], []>} : vector<8x8xf32>, vector<8x32xf32>, vector<8x32xf32> -> vector<8x32xf32>
    %38 = vector.extract_strided_slice %37 {offsets = [0, 0], sizes = [1, 32], strides = [1, 1]} : vector<8x32xf32> to vector<1x32xf32>
    %39 = arith.mulf %36, %29 : vector<8x32xf32>
    %cst_15 = arith.constant dense<0.000000e+00> : vector<8x32xf32>
    %40 = tpu.matmul %3, %39, %cst_15 {dimension_numbers = #tpu.dot_dimension_numbers<[1], [0], [0], [1], [0, 0, 1, 1], [], []>} : vector<8x8xf32>, vector<8x32xf32>, vector<8x32xf32> -> vector<8x32xf32>
    %41 = vector.extract_strided_slice %40 {offsets = [0, 0], sizes = [1, 32], strides = [1, 1]} : vector<8x32xf32> to vector<1x32xf32>
    %42 = tpu.iota {dimensions = array<i32: 1>} : vector<8x128xi32>
    %cst_16 = arith.constant 0.000000e+00 : f32
    %43 = vector.broadcast %cst_16 : f32 to vector<8x128xf32>
    %44 = arith.subf %8, %27 : vector<1x32xf32>
    %45 = arith.mulf %44, %44 : vector<1x32xf32>
    %46 = vector.shape_cast %45 : vector<1x32xf32> to vector<1x1x32xf32>
    %cst_17 = arith.constant dense<0.000000e+00> : vector<1xf32>
    %47 = vector.multi_reduction <add>, %46, %cst_17 [1, 2] : vector<1x1x32xf32> to vector<1xf32>
    %48 = vector.shape_cast %47 : vector<1xf32> to vector<1x1x1xf32>
    %49 = vector.extract %48[0, 0, 0] : f32 from vector<1x1x1xf32>
    %50 = vector.broadcast %49 : f32 to vector<1x1xf32>
    %c0_i32_18 = arith.constant 0 : i32
    %51 = vector.broadcast %c0_i32_18 : i32 to vector<8x128xi32>
    %52 = arith.cmpi eq, %42, %51 : vector<8x128xi32>
    %53 = vector.shape_cast %50 : vector<1x1xf32> to vector<1x1xf32>
    %54 = vector.broadcast %53 : vector<1x1xf32> to vector<8x128xf32>
    %55 = arith.select %52, %54, %43 : vector<8x128xi1>, vector<8x128xf32>
    %56 = arith.subf %13, %32 : vector<1x32xf32>
    %cst_19 = arith.constant 1.250000e-01 : f32
    %57 = vector.broadcast %cst_19 : f32 to vector<1x32xf32>
    %58 = arith.mulf %56, %57 : vector<1x32xf32>
    %59 = arith.mulf %58, %58 : vector<1x32xf32>
    %60 = vector.shape_cast %59 : vector<1x32xf32> to vector<1x1x32xf32>
    %cst_20 = arith.constant dense<0.000000e+00> : vector<1xf32>
    %61 = vector.multi_reduction <add>, %60, %cst_20 [1, 2] : vector<1x1x32xf32> to vector<1xf32>
    %62 = vector.shape_cast %61 : vector<1xf32> to vector<1x1x1xf32>
    %63 = vector.extract %62[0, 0, 0] : f32 from vector<1x1x1xf32>
    %64 = vector.broadcast %63 : f32 to vector<1x1xf32>
    %c1_i32 = arith.constant 1 : i32
    %65 = vector.broadcast %c1_i32 : i32 to vector<8x128xi32>
    %66 = arith.cmpi eq, %42, %65 : vector<8x128xi32>
    %67 = vector.shape_cast %64 : vector<1x1xf32> to vector<1x1xf32>
    %68 = vector.broadcast %67 : vector<1x1xf32> to vector<8x128xf32>
    %69 = arith.select %66, %68, %55 : vector<8x128xi1>, vector<8x128xf32>
    %70 = arith.subf %16, %35 : vector<1x32xf32>
    %cst_21 = arith.constant 1.250000e-01 : f32
    %71 = vector.broadcast %cst_21 : f32 to vector<1x32xf32>
    %72 = arith.mulf %70, %71 : vector<1x32xf32>
    %73 = arith.mulf %72, %72 : vector<1x32xf32>
    %74 = vector.shape_cast %73 : vector<1x32xf32> to vector<1x1x32xf32>
    %cst_22 = arith.constant dense<0.000000e+00> : vector<1xf32>
    %75 = vector.multi_reduction <add>, %74, %cst_22 [1, 2] : vector<1x1x32xf32> to vector<1xf32>
    %76 = vector.shape_cast %75 : vector<1xf32> to vector<1x1x1xf32>
    %77 = vector.extract %76[0, 0, 0] : f32 from vector<1x1x1xf32>
    %78 = vector.broadcast %77 : f32 to vector<1x1xf32>
    %c2_i32 = arith.constant 2 : i32
    %79 = vector.broadcast %c2_i32 : i32 to vector<8x128xi32>
    %80 = arith.cmpi eq, %42, %79 : vector<8x128xi32>
    %81 = vector.shape_cast %78 : vector<1x1xf32> to vector<1x1xf32>
    %82 = vector.broadcast %81 : vector<1x1xf32> to vector<8x128xf32>
    %83 = arith.select %80, %82, %69 : vector<8x128xi1>, vector<8x128xf32>
    %84 = arith.subf %19, %38 : vector<1x32xf32>
    %cst_23 = arith.constant 1.250000e-01 : f32
    %85 = vector.broadcast %cst_23 : f32 to vector<1x32xf32>
    %86 = arith.mulf %84, %85 : vector<1x32xf32>
    %87 = arith.mulf %86, %86 : vector<1x32xf32>
    %88 = vector.shape_cast %87 : vector<1x32xf32> to vector<1x1x32xf32>
    %cst_24 = arith.constant dense<0.000000e+00> : vector<1xf32>
    %89 = vector.multi_reduction <add>, %88, %cst_24 [1, 2] : vector<1x1x32xf32> to vector<1xf32>
    %90 = vector.shape_cast %89 : vector<1xf32> to vector<1x1x1xf32>
    %91 = vector.extract %90[0, 0, 0] : f32 from vector<1x1x1xf32>
    %92 = vector.broadcast %91 : f32 to vector<1x1xf32>
    %c3_i32 = arith.constant 3 : i32
    %93 = vector.broadcast %c3_i32 : i32 to vector<8x128xi32>
    %94 = arith.cmpi eq, %42, %93 : vector<8x128xi32>
    %95 = vector.shape_cast %92 : vector<1x1xf32> to vector<1x1xf32>
    %96 = vector.broadcast %95 : vector<1x1xf32> to vector<8x128xf32>
    %97 = arith.select %94, %96, %83 : vector<8x128xi1>, vector<8x128xf32>
    %98 = arith.subf %22, %41 : vector<1x32xf32>
    %cst_25 = arith.constant 1.250000e-01 : f32
    %99 = vector.broadcast %cst_25 : f32 to vector<1x32xf32>
    %100 = arith.mulf %98, %99 : vector<1x32xf32>
    %101 = arith.mulf %100, %100 : vector<1x32xf32>
    %102 = vector.shape_cast %101 : vector<1x32xf32> to vector<1x1x32xf32>
    %cst_26 = arith.constant dense<0.000000e+00> : vector<1xf32>
    %103 = vector.multi_reduction <add>, %102, %cst_26 [1, 2] : vector<1x1x32xf32> to vector<1xf32>
    %104 = vector.shape_cast %103 : vector<1xf32> to vector<1x1x1xf32>
    %105 = vector.extract %104[0, 0, 0] : f32 from vector<1x1x1xf32>
    %106 = vector.broadcast %105 : f32 to vector<1x1xf32>
    %c4_i32 = arith.constant 4 : i32
    %107 = vector.broadcast %c4_i32 : i32 to vector<8x128xi32>
    %108 = arith.cmpi eq, %42, %107 : vector<8x128xi32>
    %109 = vector.shape_cast %106 : vector<1x1xf32> to vector<1x1xf32>
    %110 = vector.broadcast %109 : vector<1x1xf32> to vector<8x128xf32>
    %111 = arith.select %108, %110, %97 : vector<8x128xi1>, vector<8x128xf32>
    %c0_27 = arith.constant 0 : index
    %c0_28 = arith.constant 0 : index
    %112 = vector.load %arg4[%c0_27, %c0_28] : memref<8x128xf32, #tpu.memory_space<vmem>>, vector<8x128xf32>
    %113 = arith.addf %112, %111 : vector<8x128xf32>
    %c0_29 = arith.constant 0 : index
    %c0_30 = arith.constant 0 : index
    %114 = vector.load %arg4[%c0_29, %c0_30] : memref<8x128xf32, #tpu.memory_space<vmem>>, vector<8x128xf32>
    tpu.vector_store %arg4[%c0_29, %c0_30], %113 {strides = array<i32>} : memref<8x128xf32, #tpu.memory_space<vmem>>, vector<8x128xf32>,
    return
  }
  func.func @transform_0(%arg0: i32, %arg1: i32) -> (i32, i32) {
    %c1_i32 = arith.constant 1 : i32
    %0 = arith.muli %arg0, %c1_i32 : i32
    %1 = arith.addi %0, %arg1 : i32
    %c0_i32 = arith.constant 0 : i32
    %c0_i32_0 = arith.constant 0 : i32
    return %c0_i32, %1 : i32, i32
  }
  func.func @transform_1(%arg0: i32, %arg1: i32) -> (i32, i32) {
    %c1_i32 = arith.constant 1 : i32
    %0 = arith.muli %arg0, %c1_i32 : i32
    %1 = arith.addi %0, %arg1 : i32
    %c0_i32 = arith.constant 0 : i32
    %c0_i32_0 = arith.constant 0 : i32
    return %c0_i32, %1 : i32, i32
  }
  func.func @transform_2(%arg0: i32, %arg1: i32) -> (i32, i32) {
    %c0_i32 = arith.constant 0 : i32
    %c0_i32_0 = arith.constant 0 : i32
    return %arg0, %c0_i32 : i32, i32
  }
}

</mosaic_0001>

<bundles_post_ra>
// kernel: tpu_custom_call.1
= control target key start
LH: loop header
LB: loop body
LE: loop exit
PB: predicated region body
PF: predicated region fallthrough
CT: control target
= control target key end

     0   :  { %7 = vsyncpa [#allocation3], 0  ;;  %s1125_s0 = inlined_call_operand.hbm [shape: f32[8,32], index: 0, kind: input, shape index: {}]   ;;  %s1126_s1 = inlined_call_operand.hbm [shape: f32[8,32], index: 1, kind: input, shape index: {}]   ;;  %s1127_s2 = inlined_call_operand.hbm [shape: f32[8,128], index: 2, kind: output, shape index: {}]  }
   0x1   :  { %8 = vsyncpa [#allocation6], 0 }
   0x2   :  { %9 = vsyncpa [#allocation4], 0  ;;  %s1038_s9 = smov [#allocation2]   ;;  %s1039_s11 = smov [#allocation5]  }
   0x3   :  { %s19_s10 = sshll.u32 %s1038_s9, 4  ;;  %s32_s12 = sshll.u32 %s1039_s11, 4  ;;  %s20_s10 = int_to_ptr.vmem [resolvable:$true] %s19_s10  ;;  %s33_s12 = int_to_ptr.vmem [resolvable:$true] %s32_s12 }
   0x4   :  { %s980_s13 = scalar_lea.vmem %s20_s10, 128  ;;  %p985_p1 = scmp.lt.s32.totalorder %s20_s10, %s20_s10 }
   0x5   :  { %p981_p0 = scmp.ne.s32.totalorder %s20_s10, %s980_s13  ;;  %p986_p2 = scmp.lt.s32.totalorder %s980_s13, %s980_s13 }
   0x7   :  { %p987_p3 = por %p986_p2, %p985_p1 }
   0x9   :  { %p988_p4 = pnand %p987_p3, %p981_p0 }
   0xb   :  { %991 = shalt.err (!%p988_p4)
}
   0xc   :  { %22 = dma.hbm_to_vmem [thread:$0]  %s1125_s0, 128, %s20_s10, [#allocation3]  }
   0xd   :  { %s1000_s16 = scalar_lea.vmem %s33_s12, 128  ;;  %p1005_p6 = scmp.lt.s32.totalorder %s33_s12, %s33_s12 }
   0xe   :  { %p1001_p5 = scmp.ne.s32.totalorder %s33_s12, %s1000_s16  ;;  %p1006_p7 = scmp.lt.s32.totalorder %s1000_s16, %s1000_s16 }
  0x10   :  { %p1007_p8 = por %p1006_p7, %p1005_p6 }
  0x12   :  { %p1008_p9 = pnand %p1007_p8, %p1001_p5 }
  0x14   :  { %1011 = shalt.err (!%p1008_p9)
}
  0x15   :  { %35 = dma.hbm_to_vmem [thread:$0]  %s1126_s1, 128, %s33_s12, [#allocation6]  }
  0x16   :  { %1032 = dma.done.wait [#allocation3], 128  }
  0x17   :  { %1033 = vsyncadd [#allocation3], 4294967168 }
  0x18   :  { %1034 = dma.done.wait [#allocation6], 128  }
  0x19   :  { %1035 = vsyncadd [#allocation6], 4294967168  ;;  %v1040_v0 = vmov 0.0   ;;  %vm1041_vm0 = vmmov 0   ;;  %vm50_vm1 = vcmask 64512   ;;  %v49_v1 = vld [vmem:[#allocation2] sm:$0xff]  ;;  %v125_v3 = vlaneseq }
  0x1a   :  { %906 = vmatprep.subr.mxu0 %v1040_v0  ;;  %908 = vmatprep.mubr.msk.f32.mxu0 %vm1041_vm0, %v1040_v0  ;;  %v1042_v2 = vmov 1.0   ;;  %v414_v14 = vld [vmem:[#allocation5] sm:$0xff]  ;;  %vm779_vm2 = vcmask 253952   ;;  %s1043_s22 = smov [#allocation7]  }
  0x1b   :  { %911 = vmatprep.subr.mxu1 %v1040_v0  ;;  %913 = vmatprep.mubr.msk.f32.mxu1 %vm1041_vm0, %v1040_v0  ;;  %v126_v4 = vshrl.u32 %v125_v3, 7  ;;  %s866_s23 = sshll.u32 %s1043_s22, 4  ;;  %s867_s23 = int_to_ptr.vmem [resolvable:$true] %s866_s23 }
  0x1c   :  { %907 = vmatpush3.msra.mxu0 %v49_v1  ;;  %s1012_s24 = scalar_lea.vmem %s867_s23, 128  ;;  %p1017_p11 = scmp.lt.s32.totalorder %s867_s23, %s867_s23 }
  0x1d   :  { %909 = vmatmul.mubr.msk.f32.vlgmr.msra.gmra.mxu0 %vm50_vm1, %v1042_v2  ;;  %916 = vmatprep.subr.mxu0 %v1040_v0  ;;  %v127_v5 = vsub.s32 0, %v126_v4  ;;  %p1013_p10 = scmp.ne.s32.totalorder %s867_s23, %s1012_s24  ;;  %p1018_p12 = scmp.lt.s32.totalorder %s1012_s24, %s1012_s24 }
  0x1e   :  { %918 = vmatprep.mubr.msk.f32.mxu0 %vm1041_vm0, %v1040_v0 }
  0x1f   :  { %p1019_p13 = por %p1018_p12, %p1017_p11 }
  0x21   :  { %p1020_p0 = pnand %p1019_p13, %p1013_p10 }
  0xdd   :  { %v120_v6 = vpop.f32.mrf.mxu0 }
  0xde   :  { %v124_v7 = vmul.f32 0.125, %v120_v6 }
  0xdf   :  { %v910_v8 = vpop.f32.mrf.mxu0 }
  0xe0   :  { %v128_v9 = vrot.slane %v124_v7, %v127_v5 }
  0xe2   :  { %v129_v10 = vsub.f32 %v49_v1, %v128_v9 }
  0xe4   :  { %v130_v11 = vmul.f32 %v129_v10, %v129_v10 }
  0xe6   :  { %912 = vmatpush3.msra.mxu1 %v130_v11  ;;  %v201_v12 = vmul.f32 %v130_v11, %v129_v10 }
  0xe7   :  { %914 = vmatmul.mubr.msk.f32.vlgmr.msra.gmra.mxu1 %vm50_vm1, %v1042_v2  ;;  %921 = vmatprep.subr.mxu1 %v1040_v0 }
  0xe8   :  { %v272_v13 = vmul.f32 %v201_v12, %v129_v10  ;;  %917 = vmatpush3.msra.mxu0 %v201_v12  ;;  %923 = vmatprep.mubr.msk.f32.mxu1 %vm1041_vm0, %v1040_v0 }
  0xe9   :  { %926 = vmatprep.subr.mxu0 %v1040_v0  ;;  %919 = vmatmul.mubr.msk.f32.vlgmr.msra.gmra.mxu0 %vm50_vm1, %v1042_v2 }
  0xea   :  { %922 = vmatpush3.msra.mxu1 %v272_v13  ;;  %v343_v15 = vmul.f32 %v272_v13, %v129_v10  ;;  %928 = vmatprep.mubr.msk.f32.mxu0 %vm1041_vm0, %v1040_v0 }
  0xeb   :  { %924 = vmatmul.mubr.msk.f32.vlgmr.msra.gmra.mxu1 %vm50_vm1, %v1042_v2  ;;  %931 = vmatprep.subr.mxu1 %v1040_v0 }
  0xec   :  { %927 = vmatpush3.msra.mxu0 %v343_v15  ;;  %932 = vmatpush3.msra.mxu1 %v414_v14 }
  0xed   :  { %933 = vmatprep.mubr.msk.f32.mxu1 %vm1041_vm0, %v1040_v0  ;;  %929 = vmatmul.mubr.msk.f32.vlgmr.msra.gmra.mxu0 %vm50_vm1, %v1042_v2 }
  0xee   :  { %936 = vmatprep.subr.mxu0 %v1040_v0  ;;  %938 = vmatprep.mubr.msk.f32.mxu0 %vm1041_vm0, %v1040_v0 }
  0xef   :  { %934 = vmatmul.mubr.msk.f32.vlgmr.msra.gmra.mxu1 %vm50_vm1, %v1042_v2  ;;  %941 = vmatprep.subr.mxu1 %v1040_v0 }
  0xf0   :  { %943 = vmatprep.mubr.msk.f32.mxu1 %vm1041_vm0, %v1040_v0 }
 0x1a7   :  { %v197_v16 = vpop.f32.mrf.mxu1 }
 0x1a9   :  { %v915_v17 = vpop.f32.mrf.mxu1  ;;  %v268_v32 = vpop.f32.mrf.mxu0 }
 0x1ab   :  { %v339_v18 = vpop.f32.mrf.mxu1  ;;  %v920_v33 = vpop.f32.mrf.mxu0 }
 0x1ad   :  { %v925_v19 = vpop.f32.mrf.mxu1  ;;  %v410_v34 = vpop.f32.mrf.mxu0 }
 0x1af   :  { %v481_v20 = vpop.f32.mrf.mxu1  ;;  %v930_v35 = vpop.f32.mrf.mxu0 }
 0x1b0   :  { %v485_v21 = vmul.f32 0.125, %v481_v20 }
 0x1b1   :  { %v935_v22 = vpop.f32.mrf.mxu1 }
 0x1b2   :  { %v489_v23 = vrot.slane %v485_v21, %v127_v5  ;;  %v777_v24 = vsub.f32 %v124_v7, %v485_v21 }
 0x1b4   :  { %v490_v25 = vsub.f32 %v414_v14, %v489_v23  ;;  %v778_v26 = vmul.f32 %v777_v24, %v777_v24 }
 0x1b6   :  { %v780_v27 = vsel %vm779_vm2, %v778_v26, 0.0  ;;  %v491_v28 = vmul.f32 %v490_v25, %v490_v25 }
 0x1b7   :  { %781 = vadd.xlane.f32.xlu0 %v780_v27 }
 0x1b8   :  { %937 = vmatpush3.msra.mxu0 %v491_v28  ;;  %v562_v29 = vmul.f32 %v491_v28, %v490_v25 }
 0x1b9   :  { %939 = vmatmul.mubr.msk.f32.vlgmr.msra.gmra.mxu0 %vm50_vm1, %v1042_v2  ;;  %946 = vmatprep.subr.mxu0 %v1040_v0 }
 0x1ba   :  { %942 = vmatpush3.msra.mxu1 %v562_v29  ;;  %v633_v30 = vmul.f32 %v562_v29, %v490_v25  ;;  %948 = vmatprep.mubr.msk.f32.mxu0 %vm1041_vm0, %v1040_v0 }
 0x1bb   :  { %944 = vmatmul.mubr.msk.f32.vlgmr.msra.gmra.mxu1 %vm50_vm1, %v1042_v2  ;;  %951 = vmatprep.subr.mxu1 %v1040_v0 }
 0x1bc   :  { %947 = vmatpush3.msra.mxu0 %v633_v30  ;;  %v704_v31 = vmul.f32 %v633_v30, %v490_v25  ;;  %953 = vmatprep.mubr.msk.f32.mxu1 %vm1041_vm0, %v1040_v0 }
 0x1bd   :  { %949 = vmatmul.mubr.msk.f32.vlgmr.msra.gmra.mxu0 %vm50_vm1, %v1042_v2 }
 0x1be   :  { %952 = vmatpush3.msra.mxu1 %v704_v31 }
 0x1bf   :  { %954 = vmatmul.mubr.msk.f32.vlgmr.msra.gmra.mxu1 %vm50_vm1, %v1042_v2 }
 0x240   :  { %v782_v36 = vpop.xlane.xlu0 %781 }
 0x241   :  { %v783_v37 = vrot.slane %v782_v36, 4 }
 0x243   :  { %v784_v38 = vadd.f32 %v783_v37, %v782_v36 }
 0x245   :  { %v785_v39 = vrot.slane %v784_v38, 2 }
 0x247   :  { %v786_v40 = vadd.f32 %v785_v39, %v784_v38 }
 0x249   :  { %v787_v41 = vrot.slane %v786_v40, 1 }
 0x24b   :  { %v788_v42 = vadd.f32 %v787_v41, %v786_v40 }
 0x24d   :  { %956 = vpush %v788_v42 }
 0x279   :  { %v558_v43 = vpop.f32.mrf.mxu0 }
 0x27a   :  { %v793_v44 = vsub.f32 %v197_v16, %v558_v43 }
 0x27b   :  { %v940_v45 = vpop.f32.mrf.mxu0  ;;  %v629_v46 = vpop.f32.mrf.mxu1 }
 0x27c   :  { %v794_v47 = vmul.f32 0.125, %v793_v44  ;;  %v809_v48 = vsub.f32 %v268_v32, %v629_v46  ;;  %v776_v32 = vand.u32 127, %v125_v3 }
 0x27d   :  { %v945_v49 = vpop.f32.mrf.mxu1  ;;  %v700_v50 = vpop.f32.mrf.mxu0 }
 0x27e   :  { %v795_v51 = vmul.f32 %v794_v47, %v794_v47  ;;  %v810_v52 = vmul.f32 0.125, %v809_v48  ;;  %v825_v53 = vsub.f32 %v339_v18, %v700_v50  ;;  %s957_s0 = spop %956  ;;  %vm790_vm3 = vcmp.eq.s32.totalorder %v776_v32, 0 }
 0x27f   :  { %v771_v54 = vpop.f32.mrf.mxu1  ;;  %v950_v55 = vpop.f32.mrf.mxu0  ;;  %v791_v33 = vstv %s957_s0  ;;  %vm806_vm4 = vcmp.eq.s32.totalorder %v776_v32, 1  ;;  %vm822_vm5 = vcmp.eq.s32.totalorder %v776_v32, 2  ;;  %vm838_vm6 = vcmp.eq.s32.totalorder %v776_v32, 3 }
 0x280   :  { %v811_v56 = vmul.f32 %v810_v52, %v810_v52  ;;  %v826_v57 = vmul.f32 0.125, %v825_v53  ;;  %v841_v58 = vsub.f32 %v410_v34, %v771_v54  ;;  %v796_v59 = vsel %vm779_vm2, %v795_v51, 0.0 }
 0x281   :  { %v955_v60 = vpop.f32.mrf.mxu1  ;;  %797 = vadd.xlane.f32.xlu0 %v796_v59  ;;  %v792_v35 = vsel %vm790_vm3, %v791_v33, 0.0  ;;  %vm854_vm7 = vcmp.eq.s32.totalorder %v776_v32, 4 }
 0x282   :  { %v827_v61 = vmul.f32 %v826_v57, %v826_v57  ;;  %v842_v62 = vmul.f32 0.125, %v841_v58  ;;  %v812_v63 = vsel %vm779_vm2, %v811_v56, 0.0 }
 0x283   :  { %813 = vadd.xlane.f32.xlu1 %v812_v63 }
 0x284   :  { %v843_v0 = vmul.f32 %v842_v62, %v842_v62  ;;  %v828_v2 = vsel %vm779_vm2, %v827_v61, 0.0 }
 0x286   :  { %v844_v1 = vsel %vm779_vm2, %v843_v0, 0.0 }
 0x287   :  { %845 = vadd.xlane.f32.xlu0 %v844_v1  ;;  %829 = vadd.xlane.f32.xlu1 %v828_v2 }
 0x30a   :  { %v798_v4 = vpop.xlane.xlu0 %797 }
 0x30b   :  { %v799_v5 = vrot.slane %v798_v4, 4 }
 0x30c   :  { %v814_v6 = vpop.xlane.xlu1 %813 }
 0x30d   :  { %v815_v7 = vrot.slane %v814_v6, 4  ;;  %v800_v8 = vadd.f32 %v799_v5, %v798_v4 }
 0x30f   :  { %v816_v9 = vadd.f32 %v815_v7, %v814_v6  ;;  %v801_v10 = vrot.slane %v800_v8, 2 }
 0x310   :  { %v846_v11 = vpop.xlane.xlu0 %845  ;;  %v830_v12 = vpop.xlane.xlu1 %829 }
 0x311   :  { %v817_v13 = vrot.slane %v816_v9, 2  ;;  %v847_v14 = vrot.slane %v846_v11, 4  ;;  %v831_v15 = vrot.slane %v830_v12, 4  ;;  %v802_v16 = vadd.f32 %v801_v10, %v800_v8 }
 0x313   :  { %v848_v17 = vadd.f32 %v847_v14, %v846_v11  ;;  %v832_v18 = vadd.f32 %v831_v15, %v830_v12  ;;  %v818_v19 = vadd.f32 %v817_v13, %v816_v9  ;;  %v803_v20 = vrot.slane %v802_v16, 1 }
 0x315   :  { %v849_v21 = vrot.slane %v848_v17, 2  ;;  %v833_v22 = vrot.slane %v832_v18, 2  ;;  %v819_v23 = vrot.slane %v818_v19, 1  ;;  %v804_v24 = vadd.f32 %v803_v20, %v802_v16 }
 0x317   :  { %v850_v25 = vadd.f32 %v849_v21, %v848_v17  ;;  %v834_v26 = vadd.f32 %v833_v22, %v832_v18  ;;  %v820_v27 = vadd.f32 %v819_v23, %v818_v19  ;;  %958 = vpush %v804_v24 }
 0x319   :  { %960 = vpush %v820_v27  ;;  %v835_v28 = vrot.slane %v834_v26, 1  ;;  %v851_v29 = vrot.slane %v850_v25, 1 }
 0x31b   :  { %v836_v30 = vadd.f32 %v835_v28, %v834_v26  ;;  %v852_v31 = vadd.f32 %v851_v29, %v850_v25 }
 0x31d   :  { %962 = vpush %v836_v30 }
 0x31e   :  { %964 = vpush %v852_v31 }
 0x348   :  { %s959_s1 = spop %958 }
 0x349   :  { %v807_v34 = vstv %s959_s1 }
 0x34a   :  { %s961_s19 = spop %960  ;;  %v808_v36 = vsel %vm806_vm4, %v807_v34, %v792_v35 }
 0x34b   :  { %v823_v37 = vstv %s961_s19 }
 0x34c   :  { %v824_v38 = vsel %vm822_vm5, %v823_v37, %v808_v36 }
 0x34e   :  { %s963_s20 = spop %962 }
 0x34f   :  { %v839_v39 = vstv %s963_s20  ;;  %s965_s21 = spop %964 }
 0x350   :  { %v840_v3 = vsel %vm838_vm6, %v839_v39, %v824_v38  ;;  %v855_v40 = vstv %s965_s21 }
 0x351   :  { %v856_v41 = vsel %vm854_vm7, %v855_v40, %v840_v3 }
 0x352   :  { %859 = vst [vmem:[#allocation7] sm:$0xff] %v856_v41 }
 0x353   :  { %1023 = shalt.err (!%p1020_p0)
}
 0x354   :  { %869 = dma.vmem_to_hbm [thread:$0]  %s867_s23, 128, %s1127_s2, [#allocation4]  }
 0x355   :  { %1036 = dma.done.wait [#allocation4], 128  }
 0x356   :  { %1037 = vsyncadd [#allocation4], 4294967168 }
 0x357   :  { %873 = vsyncpa [#allocation3], 1 }
 0x358   :  { %874 = vsyncpa [#allocation6], 1 }
 0x359   :  { %875 = vsyncpa [#allocation4], 1 }

</bundles_post_ra>
